<compile_context>
chip_gen: v5e
topology: v5e:2x2
jax: 0.10.0
libtpu: 0.0.40
codegen_flags: <defaults>
</compile_context>

<pallas_src>
import math
import functools

import jax
import jax.numpy as jnp
from jax.experimental import pallas as pl
from jax.experimental.pallas import tpu as pltpu


# ----------------------------------------------------------------------------
# Buffer setup (deterministic, mirrors nn.Module.__init__)
# ----------------------------------------------------------------------------
def make_pe_buffer(d_model: int, max_len: int = 5000) -> jnp.ndarray:
    """pe buffer: shape (max_len, 1, d_model), same construction as the PyTorch module."""
    position = jnp.arange(0, max_len, dtype=jnp.float32)[:, None]            # (max_len, 1)
    div_term = jnp.exp(
        jnp.arange(0, d_model, 2, dtype=jnp.float32) * (-math.log(10000.0) / d_model)
    )                                                                         # (d_model/2,)
    angles = position * div_term                                              # (max_len, d_model/2)
    pe = jnp.zeros((max_len, d_model), dtype=jnp.float32)
    pe = pe.at[:, 0::2].set(jnp.sin(angles))
    pe = pe.at[:, 1::2].set(jnp.cos(angles))
    return pe[:, None, :]                                                     # (max_len, 1, d_model)


# ----------------------------------------------------------------------------
# Kernels
# ----------------------------------------------------------------------------
def _pe_add_kernel(x_ref, pe_ref, o_ref, *, batch: int):
    # x_ref: (tile_s, B*D), pe_ref: (tile_s, D)
    pe_row = jnp.concatenate([pe_ref[...]] * batch, axis=-1)   # lane-wise broadcast over batch
    y = x_ref[...].astype(jnp.float32) + pe_row
    o_ref[...] = y.astype(o_ref.dtype)


def _pe_add_dropout_kernel(x_ref, pe_ref, bits_ref, o_ref, *, batch: int,
                           threshold: int, scale: float):
    pe_row = jnp.concatenate([pe_ref[...]] * batch, axis=-1)
    y = x_ref[...].astype(jnp.float32) + pe_row
    # inverted dropout: keep iff bits >= threshold  (keep prob = 1 - p, exact to 2^-32)
    keep = bits_ref[...] >= jnp.uint32(threshold)
    y = jnp.where(keep, y * scale, 0.0)
    o_ref[...] = y.astype(o_ref.dtype)


# ----------------------------------------------------------------------------
# Wrapper
# ----------------------------------------------------------------------------
def _choose_tile_s(seq_len: int, row_bytes: int) -> int:
    # ~2 MiB per x-tile keeps {x, pe, bits, out} double-buffered comfortably inside
    # v7x's 64 MiB VMEM; v5e/v6e simply have more headroom.
    target = 2 * 1024 * 1024
    tile = target // max(row_bytes, 1)
    tile = max(8, min(int(tile), 1024))
    tile -= tile % 8
    if seq_len <= tile or seq_len < 8:
        return seq_len
    return tile


def positional_encoding_forward(x, pe_buffer, *, dropout_p=0.1, training=True, rng_key=None):
    """
    x         : (seq_len, batch, d_model)
    pe_buffer : (max_len, 1, d_model) float32
    Returns dropout(x + pe[:seq_len]), same shape/dtype as x.
    """
    S, B, D = x.shape
    max_len = pe_buffer.shape[0]
    assert S <= max_len, "seq_len exceeds positional-encoding max_len"

    x2 = x.reshape(S, B * D)                           # free contiguous reshape
    pe2 = pe_buffer.reshape(max_len, D)                # (max_len, D)

    row_bytes = B * D * x.dtype.itemsize
    tile_s = _choose_tile_s(S, row_bytes)

    # pe block rows must be a multiple of 8 or equal the full pe extent; slice only
    # in the tiny-S corner case where that cannot hold on the full buffer.
    if tile_s == S and (S % 8 != 0) and S != max_len:
        pe2 = pe2[:S]

    grid = (pl.cdiv(S, tile_s),)
    x_spec = pl.BlockSpec((tile_s, B * D), lambda i: (i, 0))
    pe_spec = pl.BlockSpec((tile_s, D), lambda i: (i, 0))
    out_spec = pl.BlockSpec((tile_s, B * D), lambda i: (i, 0))

    p = float(dropout_p) if training else 0.0
    dropout_active = p > 0.0

    n_bytes = S * B * D * x.dtype.itemsize
    cost = pl.CostEstimate(
        flops=3 * S * B * D,
        transcendentals=0,
        bytes_accessed=2 * n_bytes + S * D * 4 + (S * B * D * 4 if dropout_active else 0),
    )
    cparams = pltpu.CompilerParams(dimension_semantics=("parallel",))

    if dropout_active:
        if rng_key is None:
            rng_key = jax.random.PRNGKey(0)
        bits = jax.random.bits(rng_key, (S, B * D), dtype=jnp.uint32)
        threshold = min(int(round(p * float(1 << 32))), (1 << 32) - 1)
        scale = 1.0 / (1.0 - p)
        kernel = functools.partial(
            _pe_add_dropout_kernel, batch=B, threshold=threshold, scale=scale
        )
        out2 = pl.pallas_call(
            kernel,
            out_shape=jax.ShapeDtypeStruct((S, B * D), x.dtype),
            grid=grid,
            in_specs=[x_spec, pe_spec, x_spec],
            out_specs=out_spec,
            compiler_params=cparams,
            cost_estimate=cost,
        )(x2, pe2, bits)
    else:
        kernel = functools.partial(_pe_add_kernel, batch=B)
        out2 = pl.pallas_call(
            kernel,
            out_shape=jax.ShapeDtypeStruct((S, B * D), x.dtype),
            grid=grid,
            in_specs=[x_spec, pe_spec],
            out_specs=out_spec,
            compiler_params=cparams,
            cost_estimate=cost,
        )(x2, pe2)

    return out2.reshape(S, B, D)


# ----------------------------------------------------------------------------
# Demo / check
# ----------------------------------------------------------------------------
if __name__ == "__main__":
    seq_len, batch, d_model = 8, 2, 32
    max_len = 64

    key = jax.random.PRNGKey(0)
    kx, kd = jax.random.split(key)
    x = jax.random.normal(kx, (seq_len, batch, d_model), dtype=jnp.float32)
    pe_buffer = make_pe_buffer(d_model, max_len=max_len)

    ref = x + pe_buffer[:seq_len]          # broadcasts over batch, matches torch forward

    # eval mode (dropout = identity) — deterministic, compare against reference
    out_eval = positional_encoding_forward(x, pe_buffer, dropout_p=0.1, training=False)
    out_eval = jax.block_until_ready(out_eval)
    assert out_eval.shape == x.shape and out_eval.dtype == x.dtype
    assert jnp.allclose(out_eval, ref, atol=1e-6, rtol=1e-6)

    # training mode (inverted dropout p=0.1)
    p = 0.1
    out_train = positional_encoding_forward(
        x, pe_buffer, dropout_p=p, training=True, rng_key=kd
    )
    out_train = jax.block_until_ready(out_train)
    assert out_train.shape == x.shape and out_train.dtype == x.dtype
    # every element is either exactly dropped (0) or kept & scaled by 1/(1-p)
    scaled_ref = ref / (1.0 - p)
    ok = jnp.isclose(out_train, scaled_ref, atol=1e-5) | jnp.isclose(out_train, 0.0, atol=1e-7)
    assert bool(jnp.all(ok))

    print("KERNEL_OK")
</pallas_src>

<mosaic_0001>
module attributes {stable_mosaic.version = 11 : i64} {
  func.func @_pe_add_kernel(%arg0: i32, %arg1: memref<8x64xf32, #tpu.memory_space<vmem>>, %arg2: memref<8x32xf32, #tpu.memory_space<vmem>>, %arg3: memref<8x64xf32, #tpu.memory_space<vmem>>) attributes {dimension_semantics = [#tpu.dimension_semantics<parallel>], iteration_bounds = array<i64: 1>, scalar_prefetch = 0 : i64, scratch_operands = 0 : i64, tpu.core_type = #tpu.core_type<tc>, window_params = [{transform_indices = @transform_0, window_bounds = array<i64: 8, 64>}, {transform_indices = @transform_1, window_bounds = array<i64: 8, 32>}, {transform_indices = @transform_2, window_bounds = array<i64: 8, 64>}]} {
    %c0 = arith.constant 0 : index
    %c0_0 = arith.constant 0 : index
    %0 = vector.load %arg2[%c0, %c0_0] : memref<8x32xf32, #tpu.memory_space<vmem>>, vector<8x32xf32>
    %1 = tpu.concatenate %0, %0 in 1 : vector<8x32xf32>, vector<8x32xf32> -> vector<8x64xf32>
    %c0_1 = arith.constant 0 : index
    %c0_2 = arith.constant 0 : index
    %2 = vector.load %arg1[%c0_1, %c0_2] : memref<8x64xf32, #tpu.memory_space<vmem>>, vector<8x64xf32>
    %3 = arith.addf %2, %1 : vector<8x64xf32>
    %c0_3 = arith.constant 0 : index
    %c0_4 = arith.constant 0 : index
    %4 = vector.load %arg3[%c0_3, %c0_4] : memref<8x64xf32, #tpu.memory_space<vmem>>, vector<8x64xf32>
    tpu.vector_store %arg3[%c0_3, %c0_4], %3 {strides = array<i32>} : memref<8x64xf32, #tpu.memory_space<vmem>>, vector<8x64xf32>,
    return
  }
  func.func @transform_0(%arg0: i32) -> (i32, i32) {
    %c0_i32 = arith.constant 0 : i32
    %c0_i32_0 = arith.constant 0 : i32
    return %arg0, %c0_i32 : i32, i32
  }
  func.func @transform_1(%arg0: i32) -> (i32, i32) {
    %c0_i32 = arith.constant 0 : i32
    %c0_i32_0 = arith.constant 0 : i32
    return %arg0, %c0_i32 : i32, i32
  }
  func.func @transform_2(%arg0: i32) -> (i32, i32) {
    %c0_i32 = arith.constant 0 : i32
    %c0_i32_0 = arith.constant 0 : i32
    return %arg0, %c0_i32 : i32, i32
  }
}

</mosaic_0001>

<bundles_post_ra>
// kernel: tpu_custom_call.1
= control target key start
LH: loop header
LB: loop body
LE: loop exit
PB: predicated region body
PF: predicated region fallthrough
CT: control target
= control target key end

     0   :  { %s93_s0 = inlined_call_operand.vmem [shape: f32[8,64], index: 0, kind: input, shape index: {}]   ;;  %s94_s1 = inlined_call_operand.vmem [shape: f32[64,32], index: 1, kind: input, shape index: {}]   ;;  %s95_s2 = inlined_call_operand.hbm [shape: f32[8,64], index: 2, kind: output, shape index: {}]  }
   0x1   :  { %v12_v0 = vld [vmem:[%s94_s1] sm:$0xff] }
   0x2   :  { %7 = vsyncpa [#allocation3], 0  ;;  %s67_s11 = smov 32   ;;  %vm17_vm0 = vcmask 261120   ;;  %v19_v1 = vld [vmem:[%s93_s0] sm:$0xff]  ;;  %s68_s14 = smov [#allocation2]  }
   0x3   :  { %14 = vrot.lane.b32.xlu0 %v12_v0, %s67_s11  ;;  %s28_s15 = sshll.u32 %s68_s14, 4  ;;  %s30_s18 = sshll.u32 %s95_s2, 4  ;;  %vm21_vm1 = vcmask 523264   ;;  %s29_s15 = int_to_ptr.vmem [resolvable:$true] %s28_s15  ;;  %s31_s18 = int_to_ptr.hbm [resolvable:$true] %s30_s18 }
  0x75   :  { %v15_v2 = vpop.permute.xlu0 %14 }
  0x76   :  { %v18_v3 = vsel %vm17_vm0, %v12_v0, %v15_v2 }
  0x77   :  { %v20_v4 = vadd.f32 %v19_v1, %v18_v3 }
  0x79   :  { %22 = vst.msk [vmem:[#allocation2] sm:$0xff] %vm21_vm1, %v20_v4 }
  0x7a   :  { %33 = dma.vmem_to_hbm [thread:$0]  %s29_s15, 128, %s31_s18, [#allocation3]  }
  0x7b   :  { %65 = dma.done.wait [#allocation3], 128  }
  0x7c   :  { %66 = vsyncadd [#allocation3], 4294967168 }
  0x7d   :  { %38 = vsyncpa [#allocation3], 1 }

</bundles_post_ra>
